<compile_context>
chip_gen: v6e
topology: v6e:2x2x1
jax: 0.10.0
libtpu: 0.0.40
codegen_flags: <defaults>
</compile_context>

<pallas_src>
import math

import jax
import jax.numpy as jnp
from jax.experimental import pallas as pl
from jax.experimental.pallas import tpu as pltpu

# ---- problem sizes (small, consistent with the module) ----
B, S, H = 2, 8, 32          # batch, seq_len, hidden_size
NUM_HEADS = 4
HEAD_DIM = H // NUM_HEADS   # 8
INTER = 64                  # intermediate_size
EPS = 1e-12                 # LayerNorm eps
LANES = 128                 # output padded to one dense lane tile


def _layer_norm(x, g, b):
    mu = jnp.mean(x, axis=-1, keepdims=True)
    var = jnp.mean((x - mu) ** 2, axis=-1, keepdims=True)
    return (x - mu) * jax.lax.rsqrt(var + EPS) * g + b


def _erf(x):
    # Abramowitz & Stegun 7.1.26 (max abs error 1.5e-7): exact-GELU semantics
    # using only exp / mul / add / where (guaranteed Mosaic lowerings).
    a1, a2, a3, a4, a5 = (0.254829592, -0.284496736, 1.421413741,
                          -1.453152027, 1.061405429)
    p = 0.3275911
    ax = jnp.abs(x)
    t = 1.0 / (1.0 + p * ax)
    poly = ((((a5 * t + a4) * t + a3) * t + a2) * t + a1) * t
    y = 1.0 - poly * jnp.exp(-ax * ax)
    return jnp.where(x < 0.0, -y, y)


def _gelu_exact(x):
    return 0.5 * x * (1.0 + _erf(x * (1.0 / math.sqrt(2.0))))


def bert_layer_kernel(x_ref, mask_ref, wqkv_ref, wao_ref, wi_ref, wo_ref,
                      vecs_ref, out_ref):
    x = x_ref[...]                       # (B*S, H)  f32
    mask = mask_ref[...]                 # (B, 1, S) f32 additive mask
    vecs = vecs_ref[...]                 # (8, 128)  f32 packed small vectors

    bqkv = vecs[0:1, :3 * H]             # (1, 3H) (attn scale folded into Q)
    bao = vecs[1:2, :H]
    ln1g = vecs[2:3, :H]
    ln1b = vecs[3:4, :H]
    bi = vecs[4:5, :INTER]
    bo = vecs[5:6, :H]
    ln2g = vecs[6:7, :H]
    ln2b = vecs[7:8, :H]

    # --- fused Q/K/V projection: bf16 MXU operands, f32 accumulation ---
    xb = x.astype(jnp.bfloat16)
    qkv = jnp.dot(xb, wqkv_ref[...],
                  preferred_element_type=jnp.float32) + bqkv   # (B*S, 3H) f32
    q = qkv[:, :H].reshape(B, S, H)
    k = qkv[:, H:2 * H].reshape(B, S, H)
    v = qkv[:, 2 * H:].reshape(B, S, H)

    # --- attention: per-head static lane slices, no head repacking.  Head h
    #     lives on lanes [h*HD, (h+1)*HD) exactly like PyTorch's permute+view,
    #     so the lane concat below reproduces the reference context layout. ---
    ctx_heads = []
    for h in range(NUM_HEADS):
        sl = slice(h * HEAD_DIM, (h + 1) * HEAD_DIM)
        qh = q[:, :, sl].astype(jnp.bfloat16)                  # (B, S, HD)
        kh = k[:, :, sl].astype(jnp.bfloat16)
        vh = v[:, :, sl].astype(jnp.bfloat16)
        s = jnp.einsum("bqd,bkd->bqk", qh, kh,
                       preferred_element_type=jnp.float32)     # (B, S, S)
        s = s + mask                                           # (B,1,S) bcast
        s = s - jnp.max(s, axis=-1, keepdims=True)
        ps = jnp.exp(s)
        ps = ps * pl.reciprocal(jnp.sum(ps, axis=-1, keepdims=True), approx=True)
        ctx_heads.append(
            jnp.einsum("bqk,bkd->bqd", ps.astype(jnp.bfloat16), vh,
                       preferred_element_type=jnp.float32))    # (B, S, HD)
    ctx = jnp.concatenate(ctx_heads, axis=-1).reshape(B * S, H)

    # --- BertSelfOutput: dense + residual + LayerNorm ---
    attn_proj = jnp.dot(ctx.astype(jnp.bfloat16), wao_ref[...],
                        preferred_element_type=jnp.float32) + bao
    attn_out = _layer_norm(attn_proj + x, ln1g, ln1b)

    # --- BertIntermediate: dense + GELU (exact erf) ---
    inter = jnp.dot(attn_out.astype(jnp.bfloat16), wi_ref[...],
                    preferred_element_type=jnp.float32) + bi
    inter = _gelu_exact(inter)

    # --- BertOutput: dense + residual + LayerNorm ---
    out = jnp.dot(inter.astype(jnp.bfloat16), wo_ref[...],
                  preferred_element_type=jnp.float32) + bo
    y = _layer_norm(out + attn_out, ln2g, ln2b)                # (B*S, H) f32

    # Lane-dense store: pad H -> 128 so the store / writeback DMA is one dense
    # tile (no masked vst.msk partial stores).
    out_ref[...] = jnp.concatenate(
        [y, jnp.zeros((B * S, LANES - H), jnp.float32)], axis=-1)


def prepare_params(params):
    """One-time parameter prep (deliberately NOT on the per-call forward path)."""
    (wq, bq, wk, bk, wv, bv, wao, bao, ln1g, ln1b,
     wi, bi, wo, bo, ln2g, ln2b) = params
    scale = 1.0 / math.sqrt(HEAD_DIM)
    wqkv = jnp.concatenate([wq * scale, wk, wv], axis=1)       # (H, 3H)
    bqkv = jnp.concatenate([bq * scale, bk, bv], axis=1)       # (1, 3H)

    def row(vec):
        vec = jnp.asarray(vec, jnp.float32).reshape(1, -1)
        return jnp.pad(vec, ((0, 0), (0, LANES - vec.shape[1])))

    vecs = jnp.concatenate(
        [row(bqkv), row(bao), row(ln1g), row(ln1b),
         row(bi), row(bo), row(ln2g), row(ln2b)], axis=0)      # (8, 128) f32

    return (wqkv.astype(jnp.bfloat16), wao.astype(jnp.bfloat16),
            wi.astype(jnp.bfloat16), wo.astype(jnp.bfloat16), vecs)


def bert_layer_pallas(x, mask, prepped):
    wqkv, wao, wi, wo, vecs = prepped
    x2d = x.reshape(B * S, H)   # leading-dim reshape only (no data movement)

    vmem_spec = pl.BlockSpec(memory_space=pltpu.MemorySpace.VMEM)
    out = pl.pallas_call(
        bert_layer_kernel,
        out_shape=jax.ShapeDtypeStruct((B * S, LANES), jnp.float32),
        in_specs=[vmem_spec] * 7,
        out_specs=vmem_spec,
        compiler_params=pltpu.CompilerParams(vmem_limit_bytes=32 * 1024 * 1024),
    )(x2d, mask, wqkv, wao, wi, wo, vecs)
    return out[:, :H].reshape(B, S, H)


# ---------- pure-JAX reference (mirrors the PyTorch forward, f32 exact) ----------
def bert_layer_ref(x, mask, params):
    (wq, bq, wk, bk, wv, bv, wao, bao, ln1g, ln1b,
     wi, bi, wo, bo, ln2g, ln2b) = params

    def split_heads(t):  # (B,S,H) -> (B,nh,S,dh)
        return t.reshape(B, S, NUM_HEADS, HEAD_DIM).transpose(0, 2, 1, 3)

    q = split_heads(x @ wq + bq)
    k = split_heads(x @ wk + bk)
    v = split_heads(x @ wv + bv)
    scores = jnp.einsum("bhqd,bhkd->bhqk", q, k) / math.sqrt(HEAD_DIM)
    scores = scores + mask[:, :, None, :]          # (B,1,1,S) broadcast
    probs = jax.nn.softmax(scores, axis=-1)
    ctx = jnp.einsum("bhqk,bhkd->bhqd", probs, v)
    ctx = ctx.transpose(0, 2, 1, 3).reshape(B, S, H)

    attn_out = _layer_norm(ctx @ wao + bao + x, ln1g, ln1b)
    inter = attn_out @ wi + bi
    inter = 0.5 * inter * (1.0 + jax.lax.erf(inter / math.sqrt(2.0)))
    return _layer_norm(inter @ wo + bo + attn_out, ln2g, ln2b)


def make_params(key):
    ks = jax.random.split(key, 10)
    n = lambda k, shape: (0.02 * jax.random.normal(k, shape)).astype(jnp.float32)
    wq, bq = n(ks[0], (H, H)), n(ks[1], (1, H))
    wk, bk = n(ks[2], (H, H)), n(ks[3], (1, H))
    wv, bv = n(ks[4], (H, H)), n(ks[5], (1, H))
    wao, bao = n(ks[6], (H, H)), jnp.zeros((1, H), jnp.float32)
    ln1g, ln1b = jnp.ones((1, H), jnp.float32), jnp.zeros((1, H), jnp.float32)
    wi, bi = n(ks[7], (H, INTER)), n(ks[8], (1, INTER))
    wo, bo = n(ks[9], (INTER, H)), jnp.zeros((1, H), jnp.float32)
    ln2g, ln2b = jnp.ones((1, H), jnp.float32), jnp.zeros((1, H), jnp.float32)
    return (wq, bq, wk, bk, wv, bv, wao, bao, ln1g, ln1b,
            wi, bi, wo, bo, ln2g, ln2b)


if __name__ == "__main__":
    key = jax.random.PRNGKey(0)
    kx, km, kp = jax.random.split(key, 3)
    x = jax.random.normal(kx, (B, S, H), dtype=jnp.float32)
    # additive attention mask: 0 = attend, -1e9 = masked (last 2 positions of batch 1)
    keep = jnp.ones((B, 1, S), dtype=jnp.float32)
    keep = keep.at[1, 0, S - 2:].set(0.0)
    mask = (1.0 - keep) * -1e9
    params = make_params(kp)

    prepped = prepare_params(params)               # one-time prep, not per call
    out = bert_layer_pallas(x, mask, prepped)
    out = jax.block_until_ready(out)

    ref = bert_layer_ref(x, mask, params)
    assert out.shape == (B, S, H)
    # Tolerance accounts for bf16 MXU operands + approx-reciprocal softmax denom.
    assert jnp.allclose(out, ref, rtol=2e-2, atol=2e-2), "mismatch vs. reference"
    print("KERNEL_OK")
</pallas_src>

<mosaic_0001>
module attributes {stable_mosaic.version = 11 : i64} {
  func.func @bert_layer_kernel(%arg0: memref<16x32xf32, #tpu.memory_space<vmem>>, %arg1: memref<2x1x8xf32, #tpu.memory_space<vmem>>, %arg2: memref<32x96xbf16, #tpu.memory_space<vmem>>, %arg3: memref<32x32xbf16, #tpu.memory_space<vmem>>, %arg4: memref<32x64xbf16, #tpu.memory_space<vmem>>, %arg5: memref<64x32xbf16, #tpu.memory_space<vmem>>, %arg6: memref<8x128xf32, #tpu.memory_space<vmem>>, %arg7: memref<16x128xf32, #tpu.memory_space<vmem>>) attributes {dimension_semantics = [], scalar_prefetch = 0 : i64, scratch_operands = 0 : i64, tpu.core_type = #tpu.core_type<tc>} {
    %c0 = arith.constant 0 : index
    %c0_0 = arith.constant 0 : index
    %0 = vector.load %arg0[%c0, %c0_0] : memref<16x32xf32, #tpu.memory_space<vmem>>, vector<16x32xf32>
    %c0_1 = arith.constant 0 : index
    %c0_2 = arith.constant 0 : index
    %c0_3 = arith.constant 0 : index
    %1 = vector.load %arg1[%c0_1, %c0_2, %c0_3] : memref<2x1x8xf32, #tpu.memory_space<vmem>>, vector<2x1x8xf32>
    %c0_4 = arith.constant 0 : index
    %c0_5 = arith.constant 0 : index
    %2 = vector.load %arg6[%c0_4, %c0_5] : memref<8x128xf32, #tpu.memory_space<vmem>>, vector<8x128xf32>
    %3 = vector.extract_strided_slice %2 {offsets = [0, 0], sizes = [1, 96], strides = [1, 1]} : vector<8x128xf32> to vector<1x96xf32>
    %4 = vector.extract_strided_slice %2 {offsets = [1, 0], sizes = [1, 32], strides = [1, 1]} : vector<8x128xf32> to vector<1x32xf32>
    %5 = vector.extract_strided_slice %2 {offsets = [2, 0], sizes = [1, 32], strides = [1, 1]} : vector<8x128xf32> to vector<1x32xf32>
    %6 = vector.extract_strided_slice %2 {offsets = [3, 0], sizes = [1, 32], strides = [1, 1]} : vector<8x128xf32> to vector<1x32xf32>
    %7 = vector.extract_strided_slice %2 {offsets = [4, 0], sizes = [1, 64], strides = [1, 1]} : vector<8x128xf32> to vector<1x64xf32>
    %8 = vector.extract_strided_slice %2 {offsets = [5, 0], sizes = [1, 32], strides = [1, 1]} : vector<8x128xf32> to vector<1x32xf32>
    %9 = vector.extract_strided_slice %2 {offsets = [6, 0], sizes = [1, 32], strides = [1, 1]} : vector<8x128xf32> to vector<1x32xf32>
    %10 = vector.extract_strided_slice %2 {offsets = [7, 0], sizes = [1, 32], strides = [1, 1]} : vector<8x128xf32> to vector<1x32xf32>
    %11 = arith.truncf %0 : vector<16x32xf32> to vector<16x32xbf16>
    %c0_6 = arith.constant 0 : index
    %c0_7 = arith.constant 0 : index
    %12 = vector.load %arg2[%c0_6, %c0_7] : memref<32x96xbf16, #tpu.memory_space<vmem>>, vector<32x96xbf16>
    %cst = arith.constant dense<0.000000e+00> : vector<16x96xf32>
    %13 = tpu.matmul %11, %12, %cst {dimension_numbers = #tpu.dot_dimension_numbers<[1], [0], [0], [1], [0, 0, 1, 1], [], []>} : vector<16x32xbf16>, vector<32x96xbf16>, vector<16x96xf32> -> vector<16x96xf32>
    %14 = vector.broadcast %3 : vector<1x96xf32> to vector<16x96xf32>
    %15 = arith.addf %13, %14 : vector<16x96xf32>
    %16 = vector.extract_strided_slice %15 {offsets = [0, 0], sizes = [16, 32], strides = [1, 1]} : vector<16x96xf32> to vector<16x32xf32>
    %17 = vector.shape_cast %16 : vector<16x32xf32> to vector<2x8x32xf32>
    %18 = vector.extract_strided_slice %15 {offsets = [0, 32], sizes = [16, 32], strides = [1, 1]} : vector<16x96xf32> to vector<16x32xf32>
    %19 = vector.shape_cast %18 : vector<16x32xf32> to vector<2x8x32xf32>
    %20 = vector.extract_strided_slice %15 {offsets = [0, 64], sizes = [16, 32], strides = [1, 1]} : vector<16x96xf32> to vector<16x32xf32>
    %21 = vector.shape_cast %20 : vector<16x32xf32> to vector<2x8x32xf32>
    %22 = vector.extract_strided_slice %17 {offsets = [0, 0, 0], sizes = [2, 8, 8], strides = [1, 1, 1]} : vector<2x8x32xf32> to vector<2x8x8xf32>
    %23 = arith.truncf %22 : vector<2x8x8xf32> to vector<2x8x8xbf16>
    %24 = vector.extract_strided_slice %19 {offsets = [0, 0, 0], sizes = [2, 8, 8], strides = [1, 1, 1]} : vector<2x8x32xf32> to vector<2x8x8xf32>
    %25 = arith.truncf %24 : vector<2x8x8xf32> to vector<2x8x8xbf16>
    %26 = vector.extract_strided_slice %21 {offsets = [0, 0, 0], sizes = [2, 8, 8], strides = [1, 1, 1]} : vector<2x8x32xf32> to vector<2x8x8xf32>
    %27 = arith.truncf %26 : vector<2x8x8xf32> to vector<2x8x8xbf16>
    "tpu.trace_start"() <{level = 10 : i32, message = "bqd,bkd->bqk"}> : () -> ()
    %cst_8 = arith.constant dense<0.000000e+00> : vector<2x8x8xf32>
    %28 = tpu.matmul %23, %25, %cst_8 {dimension_numbers = #tpu.dot_dimension_numbers<[2], [2], [1], [1], [0, 0, 0, 1, 1, 1], [0], [0]>} : vector<2x8x8xbf16>, vector<2x8x8xbf16>, vector<2x8x8xf32> -> vector<2x8x8xf32>
    "tpu.trace_stop"() : () -> ()
    %29 = vector.broadcast %1 : vector<2x1x8xf32> to vector<2x8x8xf32>
    %30 = arith.addf %28, %29 : vector<2x8x8xf32>
    %cst_9 = arith.constant dense<0xFF800000> : vector<2x8xf32>
    %31 = vector.multi_reduction <maximumf>, %30, %cst_9 [2] : vector<2x8x8xf32> to vector<2x8xf32>
    %32 = vector.shape_cast %31 : vector<2x8xf32> to vector<2x8x1xf32>
    %33 = vector.broadcast %32 : vector<2x8x1xf32> to vector<2x8x8xf32>
    %34 = arith.subf %30, %33 : vector<2x8x8xf32>
    %35 = math.exp %34 : vector<2x8x8xf32>
    %cst_10 = arith.constant dense<0.000000e+00> : vector<2x8xf32>
    %36 = vector.multi_reduction <add>, %35, %cst_10 [2] : vector<2x8x8xf32> to vector<2x8xf32>
    %37 = vector.shape_cast %36 : vector<2x8xf32> to vector<2x8x1xf32>
    %38 = tpu.reciprocal %37 {approx = true} : vector<2x8x1xf32> -> vector<2x8x1xf32>
    %39 = vector.broadcast %38 : vector<2x8x1xf32> to vector<2x8x8xf32>
    %40 = arith.mulf %35, %39 : vector<2x8x8xf32>
    %41 = arith.truncf %40 : vector<2x8x8xf32> to vector<2x8x8xbf16>
    "tpu.trace_start"() <{level = 10 : i32, message = "bqk,bkd->bqd"}> : () -> ()
    %cst_11 = arith.constant dense<0.000000e+00> : vector<2x8x8xf32>
    %42 = tpu.matmul %41, %27, %cst_11 {dimension_numbers = #tpu.dot_dimension_numbers<[2], [1], [1], [2], [0, 0, 0, 1, 1, 2], [0], [0]>} : vector<2x8x8xbf16>, vector<2x8x8xbf16>, vector<2x8x8xf32> -> vector<2x8x8xf32>
    "tpu.trace_stop"() : () -> ()
    %43 = vector.extract_strided_slice %17 {offsets = [0, 0, 8], sizes = [2, 8, 8], strides = [1, 1, 1]} : vector<2x8x32xf32> to vector<2x8x8xf32>
    %44 = arith.truncf %43 : vector<2x8x8xf32> to vector<2x8x8xbf16>
    %45 = vector.extract_strided_slice %19 {offsets = [0, 0, 8], sizes = [2, 8, 8], strides = [1, 1, 1]} : vector<2x8x32xf32> to vector<2x8x8xf32>
    %46 = arith.truncf %45 : vector<2x8x8xf32> to vector<2x8x8xbf16>
    %47 = vector.extract_strided_slice %21 {offsets = [0, 0, 8], sizes = [2, 8, 8], strides = [1, 1, 1]} : vector<2x8x32xf32> to vector<2x8x8xf32>
    %48 = arith.truncf %47 : vector<2x8x8xf32> to vector<2x8x8xbf16>
    "tpu.trace_start"() <{level = 10 : i32, message = "bqd,bkd->bqk"}> : () -> ()
    %cst_12 = arith.constant dense<0.000000e+00> : vector<2x8x8xf32>
    %49 = tpu.matmul %44, %46, %cst_12 {dimension_numbers = #tpu.dot_dimension_numbers<[2], [2], [1], [1], [0, 0, 0, 1, 1, 1], [0], [0]>} : vector<2x8x8xbf16>, vector<2x8x8xbf16>, vector<2x8x8xf32> -> vector<2x8x8xf32>
    "tpu.trace_stop"() : () -> ()
    %50 = vector.broadcast %1 : vector<2x1x8xf32> to vector<2x8x8xf32>
    %51 = arith.addf %49, %50 : vector<2x8x8xf32>
    %cst_13 = arith.constant dense<0xFF800000> : vector<2x8xf32>
    %52 = vector.multi_reduction <maximumf>, %51, %cst_13 [2] : vector<2x8x8xf32> to vector<2x8xf32>
    %53 = vector.shape_cast %52 : vector<2x8xf32> to vector<2x8x1xf32>
    %54 = vector.broadcast %53 : vector<2x8x1xf32> to vector<2x8x8xf32>
    %55 = arith.subf %51, %54 : vector<2x8x8xf32>
    %56 = math.exp %55 : vector<2x8x8xf32>
    %cst_14 = arith.constant dense<0.000000e+00> : vector<2x8xf32>
    %57 = vector.multi_reduction <add>, %56, %cst_14 [2] : vector<2x8x8xf32> to vector<2x8xf32>
    %58 = vector.shape_cast %57 : vector<2x8xf32> to vector<2x8x1xf32>
    %59 = tpu.reciprocal %58 {approx = true} : vector<2x8x1xf32> -> vector<2x8x1xf32>
    %60 = vector.broadcast %59 : vector<2x8x1xf32> to vector<2x8x8xf32>
    %61 = arith.mulf %56, %60 : vector<2x8x8xf32>
    %62 = arith.truncf %61 : vector<2x8x8xf32> to vector<2x8x8xbf16>
    "tpu.trace_start"() <{level = 10 : i32, message = "bqk,bkd->bqd"}> : () -> ()
    %cst_15 = arith.constant dense<0.000000e+00> : vector<2x8x8xf32>
    %63 = tpu.matmul %62, %48, %cst_15 {dimension_numbers = #tpu.dot_dimension_numbers<[2], [1], [1], [2], [0, 0, 0, 1, 1, 2], [0], [0]>} : vector<2x8x8xbf16>, vector<2x8x8xbf16>, vector<2x8x8xf32> -> vector<2x8x8xf32>
    "tpu.trace_stop"() : () -> ()
    %64 = vector.extract_strided_slice %17 {offsets = [0, 0, 16], sizes = [2, 8, 8], strides = [1, 1, 1]} : vector<2x8x32xf32> to vector<2x8x8xf32>
    %65 = arith.truncf %64 : vector<2x8x8xf32> to vector<2x8x8xbf16>
    %66 = vector.extract_strided_slice %19 {offsets = [0, 0, 16], sizes = [2, 8, 8], strides = [1, 1, 1]} : vector<2x8x32xf32> to vector<2x8x8xf32>
    %67 = arith.truncf %66 : vector<2x8x8xf32> to vector<2x8x8xbf16>
    %68 = vector.extract_strided_slice %21 {offsets = [0, 0, 16], sizes = [2, 8, 8], strides = [1, 1, 1]} : vector<2x8x32xf32> to vector<2x8x8xf32>
    %69 = arith.truncf %68 : vector<2x8x8xf32> to vector<2x8x8xbf16>
    "tpu.trace_start"() <{level = 10 : i32, message = "bqd,bkd->bqk"}> : () -> ()
    %cst_16 = arith.constant dense<0.000000e+00> : vector<2x8x8xf32>
    %70 = tpu.matmul %65, %67, %cst_16 {dimension_numbers = #tpu.dot_dimension_numbers<[2], [2], [1], [1], [0, 0, 0, 1, 1, 1], [0], [0]>} : vector<2x8x8xbf16>, vector<2x8x8xbf16>, vector<2x8x8xf32> -> vector<2x8x8xf32>
    "tpu.trace_stop"() : () -> ()
    %71 = vector.broadcast %1 : vector<2x1x8xf32> to vector<2x8x8xf32>
    %72 = arith.addf %70, %71 : vector<2x8x8xf32>
    %cst_17 = arith.constant dense<0xFF800000> : vector<2x8xf32>
    %73 = vector.multi_reduction <maximumf>, %72, %cst_17 [2] : vector<2x8x8xf32> to vector<2x8xf32>
    %74 = vector.shape_cast %73 : vector<2x8xf32> to vector<2x8x1xf32>
    %75 = vector.broadcast %74 : vector<2x8x1xf32> to vector<2x8x8xf32>
    %76 = arith.subf %72, %75 : vector<2x8x8xf32>
    %77 = math.exp %76 : vector<2x8x8xf32>
    %cst_18 = arith.constant dense<0.000000e+00> : vector<2x8xf32>
    %78 = vector.multi_reduction <add>, %77, %cst_18 [2] : vector<2x8x8xf32> to vector<2x8xf32>
    %79 = vector.shape_cast %78 : vector<2x8xf32> to vector<2x8x1xf32>
    %80 = tpu.reciprocal %79 {approx = true} : vector<2x8x1xf32> -> vector<2x8x1xf32>
    %81 = vector.broadcast %80 : vector<2x8x1xf32> to vector<2x8x8xf32>
    %82 = arith.mulf %77, %81 : vector<2x8x8xf32>
    %83 = arith.truncf %82 : vector<2x8x8xf32> to vector<2x8x8xbf16>
    "tpu.trace_start"() <{level = 10 : i32, message = "bqk,bkd->bqd"}> : () -> ()
    %cst_19 = arith.constant dense<0.000000e+00> : vector<2x8x8xf32>
    %84 = tpu.matmul %83, %69, %cst_19 {dimension_numbers = #tpu.dot_dimension_numbers<[2], [1], [1], [2], [0, 0, 0, 1, 1, 2], [0], [0]>} : vector<2x8x8xbf16>, vector<2x8x8xbf16>, vector<2x8x8xf32> -> vector<2x8x8xf32>
    "tpu.trace_stop"() : () -> ()
    %85 = vector.extract_strided_slice %17 {offsets = [0, 0, 24], sizes = [2, 8, 8], strides = [1, 1, 1]} : vector<2x8x32xf32> to vector<2x8x8xf32>
    %86 = arith.truncf %85 : vector<2x8x8xf32> to vector<2x8x8xbf16>
    %87 = vector.extract_strided_slice %19 {offsets = [0, 0, 24], sizes = [2, 8, 8], strides = [1, 1, 1]} : vector<2x8x32xf32> to vector<2x8x8xf32>
    %88 = arith.truncf %87 : vector<2x8x8xf32> to vector<2x8x8xbf16>
    %89 = vector.extract_strided_slice %21 {offsets = [0, 0, 24], sizes = [2, 8, 8], strides = [1, 1, 1]} : vector<2x8x32xf32> to vector<2x8x8xf32>
    %90 = arith.truncf %89 : vector<2x8x8xf32> to vector<2x8x8xbf16>
    "tpu.trace_start"() <{level = 10 : i32, message = "bqd,bkd->bqk"}> : () -> ()
    %cst_20 = arith.constant dense<0.000000e+00> : vector<2x8x8xf32>
    %91 = tpu.matmul %86, %88, %cst_20 {dimension_numbers = #tpu.dot_dimension_numbers<[2], [2], [1], [1], [0, 0, 0, 1, 1, 1], [0], [0]>} : vector<2x8x8xbf16>, vector<2x8x8xbf16>, vector<2x8x8xf32> -> vector<2x8x8xf32>
    "tpu.trace_stop"() : () -> ()
    %92 = vector.broadcast %1 : vector<2x1x8xf32> to vector<2x8x8xf32>
    %93 = arith.addf %91, %92 : vector<2x8x8xf32>
    %cst_21 = arith.constant dense<0xFF800000> : vector<2x8xf32>
    %94 = vector.multi_reduction <maximumf>, %93, %cst_21 [2] : vector<2x8x8xf32> to vector<2x8xf32>
    %95 = vector.shape_cast %94 : vector<2x8xf32> to vector<2x8x1xf32>
    %96 = vector.broadcast %95 : vector<2x8x1xf32> to vector<2x8x8xf32>
    %97 = arith.subf %93, %96 : vector<2x8x8xf32>
    %98 = math.exp %97 : vector<2x8x8xf32>
    %cst_22 = arith.constant dense<0.000000e+00> : vector<2x8xf32>
    %99 = vector.multi_reduction <add>, %98, %cst_22 [2] : vector<2x8x8xf32> to vector<2x8xf32>
    %100 = vector.shape_cast %99 : vector<2x8xf32> to vector<2x8x1xf32>
    %101 = tpu.reciprocal %100 {approx = true} : vector<2x8x1xf32> -> vector<2x8x1xf32>
    %102 = vector.broadcast %101 : vector<2x8x1xf32> to vector<2x8x8xf32>
    %103 = arith.mulf %98, %102 : vector<2x8x8xf32>
    %104 = arith.truncf %103 : vector<2x8x8xf32> to vector<2x8x8xbf16>
    "tpu.trace_start"() <{level = 10 : i32, message = "bqk,bkd->bqd"}> : () -> ()
    %cst_23 = arith.constant dense<0.000000e+00> : vector<2x8x8xf32>
    %105 = tpu.matmul %104, %90, %cst_23 {dimension_numbers = #tpu.dot_dimension_numbers<[2], [1], [1], [2], [0, 0, 0, 1, 1, 2], [0], [0]>} : vector<2x8x8xbf16>, vector<2x8x8xbf16>, vector<2x8x8xf32> -> vector<2x8x8xf32>
    "tpu.trace_stop"() : () -> ()
    %106 = tpu.concatenate %42, %63, %84, %105 in 2 : vector<2x8x8xf32>, vector<2x8x8xf32>, vector<2x8x8xf32>, vector<2x8x8xf32> -> vector<2x8x32xf32>
    %107 = vector.shape_cast %106 : vector<2x8x32xf32> to vector<16x32xf32>
    %108 = arith.truncf %107 : vector<16x32xf32> to vector<16x32xbf16>
    %c0_24 = arith.constant 0 : index
    %c0_25 = arith.constant 0 : index
    %109 = vector.load %arg3[%c0_24, %c0_25] : memref<32x32xbf16, #tpu.memory_space<vmem>>, vector<32x32xbf16>
    %cst_26 = arith.constant dense<0.000000e+00> : vector<16x32xf32>
    %110 = tpu.matmul %108, %109, %cst_26 {dimension_numbers = #tpu.dot_dimension_numbers<[1], [0], [0], [1], [0, 0, 1, 1], [], []>} : vector<16x32xbf16>, vector<32x32xbf16>, vector<16x32xf32> -> vector<16x32xf32>
    %111 = vector.broadcast %4 : vector<1x32xf32> to vector<16x32xf32>
    %112 = arith.addf %110, %111 : vector<16x32xf32>
    %113 = arith.addf %112, %0 : vector<16x32xf32>
    %cst_27 = arith.constant dense<0.000000e+00> : vector<16xf32>
    %114 = vector.multi_reduction <add>, %113, %cst_27 [1] : vector<16x32xf32> to vector<16xf32>
    %115 = vector.shape_cast %114 : vector<16xf32> to vector<16x1xf32>
    %cst_28 = arith.constant 3.200000e+01 : f32
    %116 = vector.broadcast %cst_28 : f32 to vector<16x1xf32>
    %117 = arith.divf %115, %116 : vector<16x1xf32>
    %118 = vector.broadcast %117 : vector<16x1xf32> to vector<16x32xf32>
    %119 = arith.subf %113, %118 : vector<16x32xf32>
    %120 = arith.mulf %119, %119 : vector<16x32xf32>
    %cst_29 = arith.constant dense<0.000000e+00> : vector<16xf32>
    %121 = vector.multi_reduction <add>, %120, %cst_29 [1] : vector<16x32xf32> to vector<16xf32>
    %122 = vector.shape_cast %121 : vector<16xf32> to vector<16x1xf32>
    %cst_30 = arith.constant 3.200000e+01 : f32
    %123 = vector.broadcast %cst_30 : f32 to vector<16x1xf32>
    %124 = arith.divf %122, %123 : vector<16x1xf32>
    %125 = vector.broadcast %117 : vector<16x1xf32> to vector<16x32xf32>
    %126 = arith.subf %113, %125 : vector<16x32xf32>
    %cst_31 = arith.constant 9.99999996E-13 : f32
    %127 = vector.broadcast %cst_31 : f32 to vector<16x1xf32>
    %128 = arith.addf %124, %127 : vector<16x1xf32>
    %129 = math.rsqrt %128 : vector<16x1xf32>
    %130 = vector.broadcast %129 : vector<16x1xf32> to vector<16x32xf32>
    %131 = arith.mulf %126, %130 : vector<16x32xf32>
    %132 = vector.broadcast %5 : vector<1x32xf32> to vector<16x32xf32>
    %133 = arith.mulf %131, %132 : vector<16x32xf32>
    %134 = vector.broadcast %6 : vector<1x32xf32> to vector<16x32xf32>
    %135 = arith.addf %133, %134 : vector<16x32xf32>
    %136 = arith.truncf %135 : vector<16x32xf32> to vector<16x32xbf16>
    %c0_32 = arith.constant 0 : index
    %c0_33 = arith.constant 0 : index
    %137 = vector.load %arg4[%c0_32, %c0_33] : memref<32x64xbf16, #tpu.memory_space<vmem>>, vector<32x64xbf16>
    %cst_34 = arith.constant dense<0.000000e+00> : vector<16x64xf32>
    %138 = tpu.matmul %136, %137, %cst_34 {dimension_numbers = #tpu.dot_dimension_numbers<[1], [0], [0], [1], [0, 0, 1, 1], [], []>} : vector<16x32xbf16>, vector<32x64xbf16>, vector<16x64xf32> -> vector<16x64xf32>
    %139 = vector.broadcast %7 : vector<1x64xf32> to vector<16x64xf32>
    %140 = arith.addf %138, %139 : vector<16x64xf32>
    %cst_35 = arith.constant 5.000000e-01 : f32
    %141 = vector.broadcast %cst_35 : f32 to vector<16x64xf32>
    %142 = arith.mulf %141, %140 : vector<16x64xf32>
    %cst_36 = arith.constant 0.707106769 : f32
    %143 = vector.broadcast %cst_36 : f32 to vector<16x64xf32>
    %144 = arith.mulf %140, %143 : vector<16x64xf32>
    %145 = math.absf %144 : vector<16x64xf32>
    %cst_37 = arith.constant 0.327591091 : f32
    %146 = vector.broadcast %cst_37 : f32 to vector<16x64xf32>
    %147 = arith.mulf %146, %145 : vector<16x64xf32>
    %cst_38 = arith.constant 1.000000e+00 : f32
    %148 = vector.broadcast %cst_38 : f32 to vector<16x64xf32>
    %149 = arith.addf %148, %147 : vector<16x64xf32>
    %cst_39 = arith.constant 1.000000e+00 : f32
    %150 = vector.broadcast %cst_39 : f32 to vector<16x64xf32>
    %151 = arith.divf %150, %149 : vector<16x64xf32>
    %cst_40 = arith.constant 1.06140542 : f32
    %152 = vector.broadcast %cst_40 : f32 to vector<16x64xf32>
    %153 = arith.mulf %152, %151 : vector<16x64xf32>
    %cst_41 = arith.constant -1.45315206 : f32
    %154 = vector.broadcast %cst_41 : f32 to vector<16x64xf32>
    %155 = arith.addf %153, %154 : vector<16x64xf32>
    %156 = arith.mulf %155, %151 : vector<16x64xf32>
    %cst_42 = arith.constant 1.42141378 : f32
    %157 = vector.broadcast %cst_42 : f32 to vector<16x64xf32>
    %158 = arith.addf %156, %157 : vector<16x64xf32>
    %159 = arith.mulf %158, %151 : vector<16x64xf32>
    %cst_43 = arith.constant -0.284496725 : f32
    %160 = vector.broadcast %cst_43 : f32 to vector<16x64xf32>
    %161 = arith.addf %159, %160 : vector<16x64xf32>
    %162 = arith.mulf %161, %151 : vector<16x64xf32>
    %cst_44 = arith.constant 0.254829586 : f32
    %163 = vector.broadcast %cst_44 : f32 to vector<16x64xf32>
    %164 = arith.addf %162, %163 : vector<16x64xf32>
    %165 = arith.mulf %164, %151 : vector<16x64xf32>
    %cst_45 = arith.constant 0.000000e+00 : f32
    %166 = vector.broadcast %cst_45 : f32 to vector<16x64xf32>
    %167 = arith.subf %166, %145 : vector<16x64xf32>
    %168 = arith.mulf %167, %145 : vector<16x64xf32>
    %169 = math.exp %168 : vector<16x64xf32>
    %170 = arith.mulf %165, %169 : vector<16x64xf32>
    %cst_46 = arith.constant 1.000000e+00 : f32
    %171 = vector.broadcast %cst_46 : f32 to vector<16x64xf32>
    %172 = arith.subf %171, %170 : vector<16x64xf32>
    %cst_47 = arith.constant 0.000000e+00 : f32
    %173 = vector.broadcast %cst_47 : f32 to vector<16x64xf32>
    %174 = arith.cmpf olt, %144, %173 : vector<16x64xf32>
    %cst_48 = arith.constant 0.000000e+00 : f32
    %175 = vector.broadcast %cst_48 : f32 to vector<16x64xf32>
    %176 = arith.subf %175, %172 : vector<16x64xf32>
    %177 = arith.select %174, %176, %172 : vector<16x64xi1>, vector<16x64xf32>
    %cst_49 = arith.constant 1.000000e+00 : f32
    %178 = vector.broadcast %cst_49 : f32 to vector<16x64xf32>
    %179 = arith.addf %178, %177 : vector<16x64xf32>
    %180 = arith.mulf %142, %179 : vector<16x64xf32>
    %181 = arith.truncf %180 : vector<16x64xf32> to vector<16x64xbf16>
    %c0_50 = arith.constant 0 : index
    %c0_51 = arith.constant 0 : index
    %182 = vector.load %arg5[%c0_50, %c0_51] : memref<64x32xbf16, #tpu.memory_space<vmem>>, vector<64x32xbf16>
    %cst_52 = arith.constant dense<0.000000e+00> : vector<16x32xf32>
    %183 = tpu.matmul %181, %182, %cst_52 {dimension_numbers = #tpu.dot_dimension_numbers<[1], [0], [0], [1], [0, 0, 1, 1], [], []>} : vector<16x64xbf16>, vector<64x32xbf16>, vector<16x32xf32> -> vector<16x32xf32>
    %184 = vector.broadcast %8 : vector<1x32xf32> to vector<16x32xf32>
    %185 = arith.addf %183, %184 : vector<16x32xf32>
    %186 = arith.addf %185, %135 : vector<16x32xf32>
    %cst_53 = arith.constant dense<0.000000e+00> : vector<16xf32>
    %187 = vector.multi_reduction <add>, %186, %cst_53 [1] : vector<16x32xf32> to vector<16xf32>
    %188 = vector.shape_cast %187 : vector<16xf32> to vector<16x1xf32>
    %cst_54 = arith.constant 3.200000e+01 : f32
    %189 = vector.broadcast %cst_54 : f32 to vector<16x1xf32>
    %190 = arith.divf %188, %189 : vector<16x1xf32>
    %191 = vector.broadcast %190 : vector<16x1xf32> to vector<16x32xf32>
    %192 = arith.subf %186, %191 : vector<16x32xf32>
    %193 = arith.mulf %192, %192 : vector<16x32xf32>
    %cst_55 = arith.constant dense<0.000000e+00> : vector<16xf32>
    %194 = vector.multi_reduction <add>, %193, %cst_55 [1] : vector<16x32xf32> to vector<16xf32>
    %195 = vector.shape_cast %194 : vector<16xf32> to vector<16x1xf32>
    %cst_56 = arith.constant 3.200000e+01 : f32
    %196 = vector.broadcast %cst_56 : f32 to vector<16x1xf32>
    %197 = arith.divf %195, %196 : vector<16x1xf32>
    %198 = vector.broadcast %190 : vector<16x1xf32> to vector<16x32xf32>
    %199 = arith.subf %186, %198 : vector<16x32xf32>
    %cst_57 = arith.constant 9.99999996E-13 : f32
    %200 = vector.broadcast %cst_57 : f32 to vector<16x1xf32>
    %201 = arith.addf %197, %200 : vector<16x1xf32>
    %202 = math.rsqrt %201 : vector<16x1xf32>
    %203 = vector.broadcast %202 : vector<16x1xf32> to vector<16x32xf32>
    %204 = arith.mulf %199, %203 : vector<16x32xf32>
    %205 = vector.broadcast %9 : vector<1x32xf32> to vector<16x32xf32>
    %206 = arith.mulf %204, %205 : vector<16x32xf32>
    %207 = vector.broadcast %10 : vector<1x32xf32> to vector<16x32xf32>
    %208 = arith.addf %206, %207 : vector<16x32xf32>
    %cst_58 = arith.constant 0.000000e+00 : f32
    %209 = vector.broadcast %cst_58 : f32 to vector<16x96xf32>
    %210 = tpu.concatenate %208, %209 in 1 : vector<16x32xf32>, vector<16x96xf32> -> vector<16x128xf32>
    %c0_59 = arith.constant 0 : index
    %c0_60 = arith.constant 0 : index
    %211 = vector.load %arg7[%c0_59, %c0_60] : memref<16x128xf32, #tpu.memory_space<vmem>>, vector<16x128xf32>
    tpu.vector_store %arg7[%c0_59, %c0_60], %210 {strides = array<i32>} : memref<16x128xf32, #tpu.memory_space<vmem>>, vector<16x128xf32>,
    return
  }
}

</mosaic_0001>

<bundles_post_ra>
// kernel: tpu_custom_call.1
= control target key start
LH: loop header
LB: loop body
LE: loop exit
PB: predicated region body
PF: predicated region fallthrough
CT: control target
= control target key end

     0   :  { %12 = vsyncpa [#allocation3], 0  ;;  %s2128_s0 = inlined_call_operand.vmem [shape: f32[16,32], index: 0, kind: input, shape index: {}]   ;;  %s2129_s1 = inlined_call_operand.hbm [shape: f32[2,1,8], index: 1, kind: input, shape index: {}]   ;;  %s2130_s2 = inlined_call_operand.vmem [shape: bf16[32,96], index: 2, kind: input, shape index: {}]   ;;  %s2131_s3 = inlined_call_operand.vmem [shape: bf16[32,32], index: 3, kind: input, shape index: {}]   ;;  %s2132_s4 = inlined_call_operand.hbm [shape: bf16[32,64], index: 4, kind: input, shape index: {}]   ;;  %s2133_s5 = inlined_call_operand.vmem [shape: bf16[64,32], index: 5, kind: input, shape index: {}]   ;;  %s2134_s6 = inlined_call_operand.vmem [shape: f32[8,128], index: 6, kind: input, shape index: {}]   ;;  %s2135_s7 = inlined_call_operand.hbm [shape: f32[16,128], index: 7, kind: output, shape index: {}]  }
   0x1   :  { %13 = vsyncpa [#allocation6], 0 }
   0x2   :  { %14 = vsyncpa [#allocation4], 0  ;;  %s1794_s24 = smov [#allocation2]  }
   0x3   :  { %s22_s25 = sshll.u32 %s1794_s24, 4  ;;  %s23_s25 = int_to_ptr.vmem [resolvable:$true] %s22_s25 }
   0x4   :  { %s1736_s26 = scalar_lea.vmem %s23_s25, 32  ;;  %p1741_p1 = scmp.lt.s32.totalorder %s23_s25, %s23_s25 }
   0x5   :  { %p1737_p0 = scmp.ne.s32.totalorder %s23_s25, %s1736_s26  ;;  %p1742_p2 = scmp.lt.s32.totalorder %s1736_s26, %s1736_s26 }
   0x7   :  { %p1743_p3 = por %p1742_p2, %p1741_p1 }
   0x9   :  { %p1744_p4 = pnand %p1743_p3, %p1737_p0 }
   0xb   :  { %1747 = shalt.err (!%p1744_p4)
}
   0xc   :  { %s1795_s27 = smov 16   ;;  %s1796_s28 = smov 1  }
   0xd   :  { %28 = dma.hbm_to_vmem [thread:$0]  %s2129_s1, 32, %s23_s25, [#allocation3], %s1795_s27, %s1795_s27, %s1796_s28  }
   0xe   :  { %s1797_s8 = smov [#allocation5]  }
   0xf   :  { %s38_s9 = sshll.u32 %s1797_s8, 4  ;;  %s39_s9 = int_to_ptr.vmem [resolvable:$true] %s38_s9 }
  0x10   :  { %s1756_s10 = scalar_lea.vmem %s39_s9, 256  ;;  %p1761_p6 = scmp.lt.s32.totalorder %s39_s9, %s39_s9 }
  0x11   :  { %p1757_p5 = scmp.ne.s32.totalorder %s39_s9, %s1756_s10  ;;  %p1762_p7 = scmp.lt.s32.totalorder %s1756_s10, %s1756_s10 }
  0x13   :  { %p1763_p8 = por %p1762_p7, %p1761_p6 }
  0x15   :  { %p1764_p9 = pnand %p1763_p8, %p1757_p5 }
  0x17   :  { %1767 = shalt.err (!%p1764_p9)
}
  0x18   :  { %s1798_s11 = smov 64   ;;  %s1799_s12 = smov 4  }
  0x19   :  { %44 = dma.hbm_to_vmem [thread:$0]  %s2132_s4, 256, %s39_s9, [#allocation6], %s1798_s11, %s1798_s11, %s1799_s12  }
  0x1a   :  { %1788 = dma.done.wait [#allocation3], 32  }
  0x1b   :  { %1789 = vsyncadd [#allocation3], 4294967264 }
  0x1c   :  { %1790 = dma.done.wait [#allocation6], 256  }
  0x1d   :  { %1791 = vsyncadd [#allocation6], 4294967040  ;;  %v1800_v0 = vmov 0.0   ;;  %vm1801_vm0 = vmmov 0   ;;  %v1669_v1 = vld [vmem:[%s2130_s2 + $0x8] sm:$0xff]   ;;  %v1670_v2 = vld [vmem:[%s2130_s2] sm:$0xff]   ;;  %v66_v6 = vlaneseq }
  0x1e   :  { %1500 = vmatprep.subr.bf16.mxu0 %v1800_v0  ;;  %1504 = vmatprep.mubr.msk.bf16.mxu0 %vm1801_vm0, %v1800_v0  ;;  %v1881_v3 = vld [vmem:[%s2128_s0] sm:$0xff]  ;;  %v1886_v4 = vld [vmem:[%s2128_s0 + $0x8] sm:$0xff]  ;;  %vm82_vm1 = vcmask 261120   ;;  %s1802_s21 = smov 96   ;;  %vm144_vm2 = vcmask 64512   ;;  %s1803_s22 = smov 88  }
  0x1f   :  { %1508 = vmatprep.subr.bf16.mxu1 %v1800_v0  ;;  %1510 = vmatprep.mubr.msk.bf16.mxu1 %vm1801_vm0, %v1800_v0  ;;  %v61_v5 = vpack.c.bf16 %v1886_v4, %v1881_v3  ;;  %v1895_v7 = vshrl.u32 %v66_v6, 7  ;;  %v1901_v9 = vld [vmem:[%s2134_s6] sm:$0xff]  ;;  %vm269_vm3 = vcmask 1043456   ;;  %s1804_s23 = smov 120   ;;  %s1805_s24 = smov 56   ;;  %vm1047_vm4 = vcmask 130048  }
  0x20   :  { %1501 = vmatpush3.bf16.msra.mxu0 %v1669_v1  ;;  %v1922_v23 = vld [vmem:[#allocation2] ss:$0 sm:$0xff]  ;;  %v1925_v27 = vld [vmem:[#allocation2 + $0x1] ss:$0 sm:$0xff]  ;;  %s1806_s25 = smov 80   ;;  %s1807_s26 = smov 112  }
  0x21   :  { %1502 = vmatprep.subr.bf16.mxu0 %v1800_v0  ;;  %v68_v8 = vsub.s32 0, %v1895_v7  ;;  %s1808_s28 = smov 48   ;;  %s1809_s29 = smov 72   ;;  %vm1050_vm5 = vcmask 195584   ;;  %vm1315_vm8 = vcmask 523264  }
  0x22   :  { %s1810_s30 = smov 104   ;;  %s1811_s8 = smov 40  }
  0x23   :  { %v69_v10 = vrot.slane %v1901_v9, %v68_v8  ;;  %s1812_s9 = smov 8   ;;  %s1813_s13 = smov 24  }
  0x24   :  { %1503 = vmatpush3.bf16.msra.mxu0 %v1670_v2  ;;  %s1814_s20 = smov [#allocation7]  }
  0x25   :  { %1514 = vmatprep.subr.bf16.mxu0 %v1800_v0  ;;  %s1409_s0 = sshll.u32 %s1814_s20, 4  ;;  %s1410_s0 = int_to_ptr.vmem [resolvable:$true] %s1409_s0 }
  0x26   :  { %p1773_p11 = scmp.lt.s32.totalorder %s1410_s0, %s1410_s0 }
  0x27   :  { %1505 = vmatmul.mubr.msk.bf16.vlgmr.msra.gmra.mxu0 %vm82_vm1, %v61_v5 }
  0x28   :  { %1516 = vmatprep.mubr.msk.bf16.mxu0 %vm1801_vm0, %v1800_v0 }
  0xe7   :  { %v120_v11 = vpop.f32.mrf.mxu0 }
  0xe8   :  { %v121_v12 = vadd.f32 %v120_v11, %v69_v10 }
  0xe9   :  { %v1506_v13 = vpop.f32.mrf.mxu0 }
  0xea   :  { %v1904_v14 = vpack.c.bf16 %v121_v12, %v121_v12 }
  0xeb   :  { %v123_v15 = vpop.f32.mrf.mxu0 }
  0xec   :  { %v124_v16 = vadd.f32 %v123_v15, %v69_v10  ;;  %142 = vrot.lane.b32.xlu0 %v1904_v14, %s1802_s21 }
  0xed   :  { %v1507_v17 = vpop.f32.mrf.mxu0 }
  0xee   :  { %v1907_v18 = vpack.c.bf16 %v124_v16, %v124_v16 }
  0xf0   :  { %192 = vrot.lane.b32.xlu0 %v1907_v18, %s1802_s21 }
 0x15e   :  { %v143_v19 = vpop.permute.xlu0 %142 }
 0x15f   :  { %v149_v20 = vsel %vm144_vm2, %v143_v19, 0 }
 0x160   :  { %1509 = vmatpush3.bf16.xpose.msra.mxu1 %v149_v20 }
 0x161   :  { %1520 = vmatprep.subr.bf16.mxu1 %v1800_v0 }
 0x162   :  { %v193_v21 = vpop.permute.xlu0 %192 }
 0x163   :  { %v198_v22 = vsel %vm144_vm2, %v193_v21, 0 }
 0x164   :  { %1515 = vmatpush3.bf16.xpose.msra.mxu0 %v198_v22 }
 0x165   :  { %1526 = vmatprep.subr.bf16.mxu0 %v1800_v0 }
 0x167   :  { %1511 = vmatmul.mubr.msk.bf16.vlgmr.msra.gmra.mxu1 %vm144_vm2, %v1904_v14 }
 0x168   :  { %1522 = vmatprep.mubr.msk.bf16.mxu1 %vm1801_vm0, %v1800_v0 }
 0x16b   :  { %1517 = vmatmul.mubr.msk.bf16.vlgmr.msra.gmra.mxu0 %vm144_vm2, %v1907_v18 }
 0x16c   :  { %1528 = vmatprep.mubr.msk.bf16.mxu0 %vm1801_vm0, %v1800_v0 }
 0x227   :  { %v185_v24 = vpop.f32.mrf.mxu1 }
 0x228   :  { %v186_v25 = vadd.f32 %v1922_v23, %v185_v24 }
 0x229   :  { %v1512_v26 = vpop.f32.mrf.mxu1 }
 0x22a   :  { %v240_v28 = vsel %vm144_vm2, %v186_v25, -inf }
 0x22b   :  { %241 = vmax.xlane.f32.xlu1 %v240_v28  ;;  %v188_v29 = vpop.f32.mrf.mxu1  ;;  %v234_v30 = vpop.f32.mrf.mxu0 }
 0x22c   :  { %v235_v31 = vadd.f32 %v1925_v27, %v234_v30 }
 0x22d   :  { %v1513_v32 = vpop.f32.mrf.mxu1  ;;  %v1518_v33 = vpop.f32.mrf.mxu0 }
 0x22e   :  { %v243_v34 = vsel %vm144_vm2, %v235_v31, -inf }
 0x22f   :  { %244 = vmax.xlane.f32.xlu1 %v243_v34  ;;  %v237_v35 = vpop.f32.mrf.mxu0 }
 0x231   :  { %v1519_v36 = vpop.f32.mrf.mxu0 }
 0x240   :  { %264 = vrot.lane.b32.xlu1 %v1904_v14, %s1798_s11 }
 0x244   :  { %313 = vrot.lane.b32.xlu1 %v1907_v18, %s1798_s11 }
 0x248   :  { %363 = vrot.lane.b32.xlu1 %v1904_v14, %s1803_s22 }
 0x2b4   :  { %v242_v37 = vpop.xlane.xlu1 %241 }
 0x2b5   :  { %v246_v38 = vsub.f32 %v186_v25, %v242_v37 }
 0x2b7   :  { %v248_v39 = vmul.f32 1.442695, %v246_v38 }
 0x2b8   :  { %v245_v40 = vpop.xlane.xlu1 %244 }
 0x2b9   :  { %1679 = vpow2.f32 %v248_v39  ;;  %v247_v41 = vsub.f32 %v235_v31, %v245_v40 }
 0x2bb   :  { %v250_v42 = vmul.f32 1.442695, %v247_v41 }
 0x2bc   :  { %v265_v43 = vpop.permute.xlu1 %264 }
 0x2bd   :  { %1681 = vpow2.f32 %v250_v42  ;;  %v271_v44 = vsel %vm269_vm3, %v265_v43, 0 }
 0x2be   :  { %1521 = vmatpush3.bf16.msra.mxu1 %v271_v44 }
 0x2bf   :  { %1532 = vmatprep.subr.bf16.mxu1 %v1800_v0 }
 0x2c0   :  { %v314_v45 = vpop.permute.xlu1 %313 }
 0x2c1   :  { %v319_v46 = vsel %vm269_vm3, %v314_v45, 0 }
 0x2c2   :  { %1527 = vmatpush3.bf16.msra.mxu0 %v319_v46 }
 0x2c3   :  { %1538 = vmatprep.subr.bf16.mxu0 %v1800_v0 }
 0x2c4   :  { %v364_v51 = vpop.permute.xlu1 %363 }
 0x2c5   :  { %v369_v58 = vsel %vm144_vm2, %v364_v51, 0 }
 0x2c6   :  { %v1680_v47 = vpop.eup %1679 }
 0x2c7   :  { %v252_v48 = vsel %vm144_vm2, %v1680_v47, 0.0 }
 0x2c8   :  { %253 = vadd.xlane.f32.xlu0 %v252_v48 }
 0x2ca   :  { %v1682_v49 = vpop.eup %1681 }
 0x2cb   :  { %v255_v50 = vsel %vm144_vm2, %v1682_v49, 0.0 }
 0x2cc   :  { %256 = vadd.xlane.f32.xlu1 %v255_v50 }
 0x2dd   :  { %413 = vrot.lane.b32.xlu1 %v1907_v18, %s1803_s22 }
 0x2de   :  { %361 = vrot.lane.b32.xlu0 %v1904_v14, %s1804_s23 }
 0x2e1   :  { %411 = vrot.lane.b32.xlu1 %v1907_v18, %s1804_s23 }
 0x351   :  { %v254_v52 = vpop.xlane.xlu0 %253 }
 0x352   :  { %1683 = vrcp.f32 %v254_v52 }
 0x355   :  { %v257_v53 = vpop.xlane.xlu1 %256  ;;  %v362_v63 = vpop.permute.xlu0 %361 }
 0x356   :  { %1685 = vrcp.f32 %v257_v53 }
 0x359   :  { %v414_v60 = vpop.permute.xlu1 %413 }
 0x35a   :  { %v419_v62 = vsel %vm144_vm2, %v414_v60, 0 }
 0x35d   :  { %v412_v1 = vpop.permute.xlu1 %411 }
 0x35f   :  { %v1684_v54 = vpop.eup %1683 }
 0x360   :  { %v260_v55 = vmul.f32 %v1684_v54, %v1680_v47 }
 0x362   :  { %v262_v56 = vpack.c.bf16 %v260_v55, %v260_v55 }
 0x363   :  { %v1686_v57 = vpop.eup %1685 }
 0x364   :  { %1523 = vmatmul.mubr.msk.bf16.vlgmr.msra.gmra.mxu1 %vm144_vm2, %v262_v56  ;;  %v261_v59 = vmul.f32 %v1686_v57, %v1682_v49 }
 0x365   :  { %1533 = vmatpush3.bf16.xpose.msra.mxu1 %v369_v58  ;;  %1534 = vmatprep.mubr.msk.bf16.mxu1 %vm1801_vm0, %v1800_v0 }
 0x366   :  { %v263_v61 = vpack.c.bf16 %v261_v59, %v261_v59  ;;  %1544 = vmatprep.subr.bf16.mxu1 %v1800_v0 }
 0x368   :  { %1529 = vmatmul.mubr.msk.bf16.vlgmr.msra.gmra.mxu0 %vm144_vm2, %v263_v61 }
 0x369   :  { %1539 = vmatpush3.bf16.xpose.msra.mxu0 %v419_v62  ;;  %1540 = vmatprep.mubr.msk.bf16.mxu0 %vm1801_vm0, %v1800_v0 }
 0x36a   :  { %1550 = vmatprep.subr.bf16.mxu0 %v1800_v0 }
 0x36c   :  { %1535 = vmatmul.mubr.msk.bf16.vlgmr.msra.gmra.mxu1 %vm144_vm2, %v362_v63 }
 0x36d   :  { %1546 = vmatprep.mubr.msk.bf16.mxu1 %vm1801_vm0, %v1800_v0 }
 0x370   :  { %1541 = vmatmul.mubr.msk.bf16.vlgmr.msra.gmra.mxu0 %vm144_vm2, %v412_v1 }
 0x371   :  { %1552 = vmatprep.mubr.msk.bf16.mxu0 %vm1801_vm0, %v1800_v0 }
 0x424   :  { %v1960_v2 = vpop.f32.mrf.mxu1 }
 0x426   :  { %v1524_v5 = vpop.f32.mrf.mxu1 }
 0x428   :  { %v310_v6 = vpop.f32.mrf.mxu1  ;;  %v1962_v8 = vpop.f32.mrf.mxu0 }
 0x42a   :  { %v1525_v10 = vpop.f32.mrf.mxu1  ;;  %v1530_v11 = vpop.f32.mrf.mxu0 }
 0x42c   :  { %v358_v12 = vpop.f32.mrf.mxu0  ;;  %v405_v13 = vpop.f32.mrf.mxu1 }
 0x42d   :  { %v406_v15 = vadd.f32 %v1922_v23, %v405_v13 }
 0x42e   :  { %v1531_v16 = vpop.f32.mrf.mxu0  ;;  %v1536_v17 = vpop.f32.mrf.mxu1 }
 0x42f   :  { %v461_v19 = vsel %vm144_vm2, %v406_v15, -inf }
 0x430   :  { %462 = vmax.xlane.f32.xlu1 %v461_v19  ;;  %v408_v20 = vpop.f32.mrf.mxu1  ;;  %v455_v21 = vpop.f32.mrf.mxu0 }
 0x431   :  { %v456_v22 = vadd.f32 %v1925_v27, %v455_v21 }
 0x432   :  { %v1537_v24 = vpop.f32.mrf.mxu1  ;;  %v1542_v25 = vpop.f32.mrf.mxu0 }
 0x433   :  { %v464_v26 = vsel %vm144_vm2, %v456_v22, -inf }
 0x434   :  { %465 = vmax.xlane.f32.xlu0 %v464_v26  ;;  %v458_v28 = vpop.f32.mrf.mxu0 }
 0x436   :  { %v1543_v29 = vpop.f32.mrf.mxu0 }
 0x441   :  { %485 = vrot.lane.b32.xlu1 %v1904_v14, %s1805_s24 }
 0x445   :  { %583 = vrot.lane.b32.xlu1 %v1904_v14, %s1806_s25 }
 0x44a   :  { %533 = vrot.lane.b32.xlu0 %v1907_v18, %s1805_s24 }
 0x44e   :  { %581 = vrot.lane.b32.xlu0 %v1904_v14, %s1807_s26 }
 0x4b9   :  { %v463_v30 = vpop.xlane.xlu1 %462 }
 0x4ba   :  { %v467_v31 = vsub.f32 %v406_v15, %v463_v30 }
 0x4bc   :  { %v469_v32 = vmul.f32 1.442695, %v467_v31 }
 0x4bd   :  { %v486_v33 = vpop.permute.xlu1 %485  ;;  %v466_v34 = vpop.xlane.xlu0 %465 }
 0x4be   :  { %1687 = vpow2.f32 %v469_v32  ;;  %v491_v35 = vsel %vm269_vm3, %v486_v33, 0  ;;  %v468_v36 = vsub.f32 %v456_v22, %v466_v34 }
 0x4bf   :  { %1545 = vmatpush3.bf16.msra.mxu1 %v491_v35 }
 0x4c0   :  { %v471_v37 = vmul.f32 1.442695, %v468_v36  ;;  %1556 = vmatprep.subr.bf16.mxu1 %v1800_v0 }
 0x4c1   :  { %v534_v38 = vpop.permute.xlu0 %533  ;;  %v584_v44 = vpop.permute.xlu1 %583 }
 0x4c2   :  { %1689 = vpow2.f32 %v471_v37  ;;  %v539_v39 = vsel %vm269_vm3, %v534_v38, 0  ;;  %v589_v51 = vsel %vm144_vm2, %v584_v44, 0 }
 0x4c3   :  { %1551 = vmatpush3.bf16.msra.mxu0 %v539_v39 }
 0x4c4   :  { %1562 = vmatprep.subr.bf16.mxu0 %v1800_v0 }
 0x4c5   :  { %v582_v56 = vpop.permute.xlu0 %581 }
 0x4cb   :  { %v1688_v40 = vpop.eup %1687 }
 0x4cc   :  { %v473_v41 = vsel %vm144_vm2, %v1688_v40, 0.0 }
 0x4cd   :  { %474 = vadd.xlane.f32.xlu1 %v473_v41 }
 0x4cf   :  { %v1690_v42 = vpop.eup %1689 }
 0x4d0   :  { %v476_v43 = vsel %vm144_vm2, %v1690_v42, 0.0 }
 0x4d1   :  { %477 = vadd.xlane.f32.xlu1 %v476_v43 }
 0x4e2   :  { %633 = vrot.lane.b32.xlu1 %v1907_v18, %s1806_s25 }
 0x4e6   :  { %631 = vrot.lane.b32.xlu1 %v1907_v18, %s1807_s26 }
 0x556   :  { %v475_v45 = vpop.xlane.xlu1 %474 }
 0x557   :  { %1691 = vrcp.f32 %v475_v45 }
 0x55a   :  { %v478_v46 = vpop.xlane.xlu1 %477 }
 0x55b   :  { %1693 = vrcp.f32 %v478_v46 }
 0x55e   :  { %v634_v53 = vpop.permute.xlu1 %633 }
 0x55f   :  { %v639_v55 = vsel %vm144_vm2, %v634_v53, 0 }
 0x562   :  { %v632_v57 = vpop.permute.xlu1 %631 }
 0x564   :  { %v1692_v47 = vpop.eup %1691 }
 0x565   :  { %v481_v48 = vmul.f32 %v1692_v47, %v1688_v40 }
 0x567   :  { %v483_v49 = vpack.c.bf16 %v481_v48, %v481_v48 }
 0x568   :  { %v1694_v50 = vpop.eup %1693 }
 0x569   :  { %1547 = vmatmul.mubr.msk.bf16.vlgmr.msra.gmra.mxu1 %vm144_vm2, %v483_v49  ;;  %v482_v52 = vmul.f32 %v1694_v50, %v1690_v42 }
 0x56a   :  { %1557 = vmatpush3.bf16.xpose.msra.mxu1 %v589_v51  ;;  %1558 = vmatprep.mubr.msk.bf16.mxu1 %vm1801_vm0, %v1800_v0 }
 0x56b   :  { %v484_v54 = vpack.c.bf16 %v482_v52, %v482_v52  ;;  %1568 = vmatprep.subr.bf16.mxu1 %v1800_v0 }
 0x56d   :  { %1553 = vmatmul.mubr.msk.bf16.vlgmr.msra.gmra.mxu0 %vm144_vm2, %v484_v54 }
 0x56e   :  { %1563 = vmatpush3.bf16.xpose.msra.mxu0 %v639_v55  ;;  %1564 = vmatprep.mubr.msk.bf16.mxu0 %vm1801_vm0, %v1800_v0 }
 0x56f   :  { %1574 = vmatprep.subr.bf16.mxu0 %v1800_v0 }
 0x571   :  { %1559 = vmatmul.mubr.msk.bf16.vlgmr.msra.gmra.mxu1 %vm144_vm2, %v582_v56 }
 0x572   :  { %1570 = vmatprep.mubr.msk.bf16.mxu1 %vm1801_vm0, %v1800_v0 }
 0x575   :  { %1565 = vmatmul.mubr.msk.bf16.vlgmr.msra.gmra.mxu0 %vm144_vm2, %v632_v57 }
 0x576   :  { %1576 = vmatprep.mubr.msk.bf16.mxu0 %vm1801_vm0, %v1800_v0 }
 0x629   :  { %v1996_v58 = vpop.f32.mrf.mxu1 }
 0x62b   :  { %v1548_v59 = vpop.f32.mrf.mxu1 }
 0x62d   :  { %v530_v60 = vpop.f32.mrf.mxu1  ;;  %v1998_v61 = vpop.f32.mrf.mxu0 }
 0x62e   :  { %v1654_v62 = vpack.i.bf16 %v1998_v61, %v1996_v58 }
 0x62f   :  { %v1549_v63 = vpop.f32.mrf.mxu1  ;;  %v1554_v1 = vpop.f32.mrf.mxu0 }
 0x631   :  { %v578_v5 = vpop.f32.mrf.mxu0  ;;  %v625_v6 = vpop.f32.mrf.mxu1 }
 0x632   :  { %v626_v10 = vadd.f32 %v1922_v23, %v625_v6 }
 0x633   :  { %v1555_v11 = vpop.f32.mrf.mxu0  ;;  %v1560_v12 = vpop.f32.mrf.mxu1 }
 0x634   :  { %v681_v13 = vsel %vm144_vm2, %v626_v10, -inf }
 0x635   :  { %682 = vmax.xlane.f32.xlu0 %v681_v13  ;;  %v628_v15 = vpop.f32.mrf.mxu1  ;;  %v675_v16 = vpop.f32.mrf.mxu0 }
 0x636   :  { %v676_v17 = vadd.f32 %v1925_v27, %v675_v16 }
 0x637   :  { %v1561_v19 = vpop.f32.mrf.mxu1  ;;  %v1566_v20 = vpop.f32.mrf.mxu0 }
 0x638   :  { %v684_v21 = vsel %vm144_vm2, %v676_v17, -inf }
 0x639   :  { %685 = vmax.xlane.f32.xlu1 %v684_v21  ;;  %v678_v22 = vpop.f32.mrf.mxu0 }
 0x63b   :  { %v1567_v24 = vpop.f32.mrf.mxu0 }
 0x64a   :  { %705 = vrot.lane.b32.xlu1 %v1904_v14, %s1808_s28 }
 0x64e   :  { %803 = vrot.lane.b32.xlu1 %v1904_v14, %s1809_s29 }
 0x652   :  { %853 = vrot.lane.b32.xlu1 %v1907_v18, %s1809_s29 }
 0x656   :  { %851 = vrot.lane.b32.xlu1 %v1907_v18, %s1810_s30 }
 0x6be   :  { %v683_v25 = vpop.xlane.xlu0 %682 }
 0x6bf   :  { %v687_v26 = vsub.f32 %v626_v10, %v683_v25 }
 0x6c1   :  { %v689_v28 = vmul.f32 1.442695, %v687_v26 }
 0x6c2   :  { %v686_v29 = vpop.xlane.xlu1 %685 }
 0x6c3   :  { %1695 = vpow2.f32 %v689_v28  ;;  %v688_v30 = vsub.f32 %v676_v17, %v686_v29 }
 0x6c5   :  { %v691_v31 = vmul.f32 1.442695, %v688_v30 }
 0x6c6   :  { %v706_v32 = vpop.permute.xlu1 %705 }
 0x6c7   :  { %1697 = vpow2.f32 %v691_v31  ;;  %v711_v33 = vsel %vm269_vm3, %v706_v32, 0 }
 0x6c8   :  { %1569 = vmatpush3.bf16.msra.mxu1 %v711_v33 }
 0x6c9   :  { %1580 = vmatprep.subr.bf16.mxu1 %v1800_v0 }
 0x6ca   :  { %v804_v43 = vpop.permute.xlu1 %803 }
 0x6cb   :  { %v809_v47 = vsel %vm144_vm2, %v804_v43, 0 }
 0x6ce   :  { %v854_v49 = vpop.permute.xlu1 %853 }
 0x6cf   :  { %v859_v51 = vsel %vm144_vm2, %v854_v49, 0 }
 0x6d0   :  { %v1696_v34 = vpop.eup %1695 }
 0x6d1   :  { %v693_v35 = vsel %vm144_vm2, %v1696_v34, 0.0 }
 0x6d2   :  { %694 = vadd.xlane.f32.xlu0 %v693_v35  ;;  %v852_v53 = vpop.permute.xlu1 %851 }
 0x6d4   :  { %v1698_v36 = vpop.eup %1697 }
 0x6d5   :  { %v696_v37 = vsel %vm144_vm2, %v1698_v36, 0.0 }
 0x6d6   :  { %697 = vadd.xlane.f32.xlu0 %v696_v37 }
 0x6ec   :  { %753 = vrot.lane.b32.xlu0 %v1907_v18, %s1808_s28 }
 0x6f0   :  { %801 = vrot.lane.b32.xlu0 %v1904_v14, %s1810_s30 }
 0x75b   :  { %v695_v38 = vpop.xlane.xlu0 %694 }
 0x75c   :  { %1699 = vrcp.f32 %v695_v38 }
 0x75f   :  { %v698_v39 = vpop.xlane.xlu0 %697 }
 0x760   :  { %1701 = vrcp.f32 %v698_v39 }
 0x763   :  { %v754_v40 = vpop.permute.xlu0 %753 }
 0x764   :  { %v759_v41 = vsel %vm269_vm3, %v754_v40, 0  ;;  %v1671_v40 = vld [vmem:[%s2131_s3 + $0x8] sm:$0xff]  }
 0x765   :  { %1575 = vmatpush3.bf16.msra.mxu0 %v759_v41  ;;  %v1672_v41 = vld [vmem:[%s2131_s3] sm:$0xff]  }
 0x766   :  { %1586 = vmatprep.subr.bf16.mxu0 %v1800_v0 }
 0x767   :  { %v802_v52 = vpop.permute.xlu0 %801 }
 0x769   :  { %v1700_v42 = vpop.eup %1699 }
 0x76a   :  { %v701_v44 = vmul.f32 %v1700_v42, %v1696_v34 }
 0x76c   :  { %v703_v45 = vpack.c.bf16 %v701_v44, %v701_v44 }
 0x76d   :  { %v1702_v46 = vpop.eup %1701 }
 0x76e   :  { %1571 = vmatmul.mubr.msk.bf16.vlgmr.msra.gmra.mxu1 %vm144_vm2, %v703_v45  ;;  %v702_v48 = vmul.f32 %v1702_v46, %v1698_v36 }
 0x76f   :  { %1581 = vmatpush3.bf16.xpose.msra.mxu1 %v809_v47  ;;  %1582 = vmatprep.mubr.msk.bf16.mxu1 %vm1801_vm0, %v1800_v0 }
 0x770   :  { %v704_v50 = vpack.c.bf16 %v702_v48, %v702_v48  ;;  %1592 = vmatprep.subr.bf16.mxu1 %v1800_v0 }
 0x772   :  { %1577 = vmatmul.mubr.msk.bf16.vlgmr.msra.gmra.mxu0 %vm144_vm2, %v704_v50 }
 0x773   :  { %1587 = vmatpush3.bf16.xpose.msra.mxu0 %v859_v51  ;;  %1588 = vmatprep.mubr.msk.bf16.mxu0 %vm1801_vm0, %v1800_v0 }
 0x774   :  { %1598 = vmatprep.subr.bf16.mxu0 %v1800_v0 }
 0x776   :  { %1583 = vmatmul.mubr.msk.bf16.vlgmr.msra.gmra.mxu1 %vm144_vm2, %v802_v52 }
 0x777   :  { %1594 = vmatprep.mubr.msk.bf16.mxu1 %vm1801_vm0, %v1800_v0 }
 0x77a   :  { %1589 = vmatmul.mubr.msk.bf16.vlgmr.msra.gmra.mxu0 %vm144_vm2, %v852_v53 }
 0x77b   :  { %1600 = vmatprep.mubr.msk.bf16.mxu0 %vm1801_vm0, %v1800_v0 }
 0x82e   :  { %v747_v54 = vpop.f32.mrf.mxu1 }
 0x830   :  { %v1572_v55 = vpop.f32.mrf.mxu1 }
 0x832   :  { %v750_v56 = vpop.f32.mrf.mxu1  ;;  %v795_v57 = vpop.f32.mrf.mxu0 }
 0x834   :  { %v1573_v59 = vpop.f32.mrf.mxu1  ;;  %v1578_v60 = vpop.f32.mrf.mxu0 }
 0x836   :  { %v798_v63 = vpop.f32.mrf.mxu0  ;;  %v845_v1 = vpop.f32.mrf.mxu1 }
 0x837   :  { %v846_v5 = vadd.f32 %v1922_v23, %v845_v1  ;;  %v1659_v23 = vpack.i.bf16 %v795_v57, %v747_v54 }
 0x838   :  { %v1579_v6 = vpop.f32.mrf.mxu0  ;;  %v1584_v10 = vpop.f32.mrf.mxu1 }
 0x839   :  { %v901_v11 = vsel %vm144_vm2, %v846_v5, -inf }
 0x83a   :  { %902 = vmax.xlane.f32.xlu0 %v901_v11  ;;  %v848_v12 = vpop.f32.mrf.mxu1  ;;  %v895_v13 = vpop.f32.mrf.mxu0 }
 0x83b   :  { %v896_v15 = vadd.f32 %v1925_v27, %v895_v13  ;;  %v1060_v13 = vsub.s32 1, %v1895_v7 }
 0x83c   :  { %v1585_v16 = vpop.f32.mrf.mxu1  ;;  %v1590_v17 = vpop.f32.mrf.mxu0 }
 0x83d   :  { %v904_v19 = vsel %vm144_vm2, %v896_v15, -inf }
 0x83e   :  { %905 = vmax.xlane.f32.xlu1 %v904_v19  ;;  %v898_v20 = vpop.f32.mrf.mxu0 }
 0x840   :  { %v1591_v21 = vpop.f32.mrf.mxu0 }
 0x84f   :  { %925 = vrot.lane.b32.xlu1 %v1904_v14, %s1811_s8 }
 0x853   :  { %1655 = vrot.lane.b32.xlu1 %v1654_v62, %s1812_s9 }
 0x857   :  { %1660 = vrot.lane.b32.xlu1 %v1659_v23, %s1795_s27 }
 0x8c3   :  { %v903_v27 = vpop.xlane.xlu0 %902 }
 0x8c4   :  { %v907_v22 = vsub.f32 %v846_v5, %v903_v27 }
 0x8c6   :  { %v909_v24 = vmul.f32 1.442695, %v907_v22 }
 0x8c7   :  { %v906_v25 = vpop.xlane.xlu1 %905 }
 0x8c8   :  { %1703 = vpow2.f32 %v909_v24  ;;  %v908_v26 = vsub.f32 %v896_v15, %v906_v25  ;;  %v1061_v15 = vrot.slane %v1901_v9, %v1060_v13 }
 0x8ca   :  { %v911_v28 = vmul.f32 1.442695, %v908_v26 }
 0x8cb   :  { %v926_v29 = vpop.permute.xlu1 %925 }
 0x8cc   :  { %1705 = vpow2.f32 %v911_v28  ;;  %v931_v14 = vsel %vm269_vm3, %v926_v29, 0 }
 0x8cd   :  { %1593 = vmatpush3.bf16.msra.mxu1 %v931_v14 }
 0x8ce   :  { %1604 = vmatprep.subr.bf16.mxu1 %v1800_v0 }
 0x8cf   :  { %v1656_v51 = vpop.permute.xlu1 %1655 }
 0x8d0   :  { %v1658_v53 = vunpack.i.h.bf16 %v1656_v51  ;;  %v1657_v54 = vunpack.i.l.bf16 %v1656_v51  ;;  %v1677_v51 = vld [vmem:[%s2133_s5 + $0x8] sm:$0xff]  }
 0x8d2   :  { %v1046_v59 = vsel %vm144_vm2, %v1962_v8, %v1658_v53  ;;  %v1045_v60 = vsel %vm144_vm2, %v1960_v2, %v1657_v54  ;;  %v1166_v53 = vsub.s32 4, %v1895_v7 }
 0x8d3   :  { %v1661_v52 = vpop.permute.xlu1 %1660 }
 0x8d4   :  { %v1663_v55 = vunpack.i.h.bf16 %v1661_v52  ;;  %v1662_v56 = vunpack.i.l.bf16 %v1661_v52  ;;  %v1678_v52 = vld [vmem:[%s2133_s5] sm:$0xff]   ;;  %v1167_v54 = vrot.slane %v1901_v9, %v1166_v53 }
 0x8d5   :  { %v1704_v30 = vpop.eup %1703 }
 0x8d6   :  { %v913_v58 = vsel %vm144_vm2, %v1704_v30, 0.0  ;;  %v1048_v5 = vsel %vm1047_vm4, %v1045_v60, %v1662_v56  ;;  %v1049_v6 = vsel %vm1047_vm4, %v1046_v59, %v1663_v55 }
 0x8d7   :  { %914 = vadd.xlane.f32.xlu0 %v913_v58 }
 0x8d9   :  { %v1706_v61 = vpop.eup %1705 }
 0x8da   :  { %v916_v62 = vsel %vm144_vm2, %v1706_v61, 0.0 }
 0x8db   :  { %917 = vadd.xlane.f32.xlu0 %v916_v62  ;;  %v1673_v62 = vld [vmem:[#allocation5 + $0x8] sm:$0xff]  }
 0x8f1   :  { %973 = vrot.lane.b32.xlu0 %v1907_v18, %s1811_s8 }
 0x960   :  { %v915_v31 = vpop.xlane.xlu0 %914 }
 0x961   :  { %1707 = vrcp.f32 %v915_v31 }
 0x964   :  { %v918_v32 = vpop.xlane.xlu0 %917 }
 0x965   :  { %1709 = vrcp.f32 %v918_v32 }
 0x968   :  { %v974_v33 = vpop.permute.xlu0 %973 }
 0x969   :  { %v979_v34 = vsel %vm269_vm3, %v974_v33, 0 }
 0x96a   :  { %1599 = vmatpush3.bf16.msra.mxu0 %v979_v34 }
 0x96b   :  { %1612 = vmatprep.subr.bf16.mxu0 %v1800_v0 }
 0x96e   :  { %v1708_v35 = vpop.eup %1707 }
 0x96f   :  { %v921_v36 = vmul.f32 %v1708_v35, %v1704_v30 }
 0x971   :  { %v923_v37 = vpack.c.bf16 %v921_v36, %v921_v36 }
 0x972   :  { %v1710_v38 = vpop.eup %1709 }
 0x973   :  { %1595 = vmatmul.mubr.msk.bf16.vlgmr.msra.gmra.mxu1 %vm144_vm2, %v923_v37  ;;  %v922_v39 = vmul.f32 %v1710_v38, %v1706_v61  ;;  %v1149_v37 = vsub.s32 2, %v1895_v7 }
 0x974   :  { %1608 = vmatprep.mubr.msk.bf16.mxu1 %vm1801_vm0, %v1800_v0  ;;  %1605 = vmatpush3.bf16.msra.mxu1 %v1671_v40  ;;  %v1155_v40 = vsub.s32 3, %v1895_v7 }
 0x975   :  { %v924_v18 = vpack.c.bf16 %v922_v39, %v922_v39  ;;  %1606 = vmatprep.subr.bf16.mxu1 %v1800_v0 }
 0x977   :  { %1601 = vmatmul.mubr.msk.bf16.vlgmr.msra.gmra.mxu0 %vm144_vm2, %v924_v18  ;;  %v1150_v18 = vrot.slane %v1901_v9, %v1149_v37 }
 0x978   :  { %1616 = vmatprep.mubr.msk.bf16.mxu0 %vm1801_vm0, %v1800_v0  ;;  %1607 = vmatpush3.bf16.msra.mxu1 %v1672_v41 }
 0x979   :  { %1620 = vmatprep.subr.bf16.mxu1 %v1800_v0  ;;  %1613 = vmatpush3.bf16.msra.mxu0 %v1673_v62 }
 0x97a   :  { %1614 = vmatprep.subr.bf16.mxu0 %v1800_v0 }
 0xa33   :  { %v967_v42 = vpop.f32.mrf.mxu1 }
 0xa35   :  { %v1596_v43 = vpop.f32.mrf.mxu1 }
 0xa37   :  { %v970_v44 = vpop.f32.mrf.mxu1  ;;  %v1015_v45 = vpop.f32.mrf.mxu0 }
 0xa38   :  { %v1664_v46 = vpack.i.bf16 %v1015_v45, %v967_v42  ;;  %v1156_v44 = vrot.slane %v1901_v9, %v1155_v40 }
 0xa39   :  { %v1597_v47 = vpop.f32.mrf.mxu1  ;;  %v1602_v48 = vpop.f32.mrf.mxu0 }
 0xa3a   :  { %1665 = vrot.lane.b32.xlu0 %v1664_v46, %s1813_s13 }
 0xa3b   :  { %v1018_v49 = vpop.f32.mrf.mxu0 }
 0xa3c   :  { %v1675_v49 = vld [vmem:[%s2133_s5 + $0x18] sm:$0xff]  }
 0xa3d   :  { %v1603_v50 = vpop.f32.mrf.mxu0 }
 0xa3e   :  { %v1676_v50 = vld [vmem:[%s2133_s5 + $0x10] sm:$0xff]  }
 0xaac   :  { %v1666_v57 = vpop.permute.xlu0 %1665 }
 0xaad   :  { %v1668_v63 = vunpack.i.h.bf16 %v1666_v57  ;;  %v1667_v1 = vunpack.i.l.bf16 %v1666_v57 }
 0xaaf   :  { %v1052_v10 = vsel %vm1050_vm5, %v1049_v6, %v1668_v63  ;;  %v1051_v11 = vsel %vm1050_vm5, %v1048_v5, %v1667_v1 }
 0xab0   :  { %v1053_v12 = vpack.c.bf16 %v1052_v10, %v1051_v11 }
 0xab2   :  { %1609 = vmatmul.mubr.msk.bf16.vlgmr.msra.gmra.mxu1 %vm82_vm1, %v1053_v12 }
 0xab3   :  { %1628 = vmatprep.mubr.msk.bf16.mxu1 %vm1801_vm0, %v1800_v0  ;;  %1621 = vmatpush3.bf16.msra.mxu1 %v1675_v49 }
 0xab4   :  { %1622 = vmatprep.subr.bf16.mxu1 %v1800_v0 }
 0xab7   :  { %1623 = vmatpush3.bf16.msra.mxu1 %v1676_v50 }
 0xab8   :  { %1624 = vmatprep.subr.bf16.mxu1 %v1800_v0 }
 0xabb   :  { %1625 = vmatpush3.bf16.msra.mxu1 %v1677_v51 }
 0xabc   :  { %1626 = vmatprep.subr.bf16.mxu1 %v1800_v0 }
 0xabf   :  { %1627 = vmatpush3.bf16.msra.mxu1 %v1678_v52  ;;  %v1289_v52 = vsub.s32 5, %v1895_v7 }
 0xac1   :  { %v1290_v53 = vrot.slane %v1901_v9, %v1289_v52 }
 0xb72   :  { %v1111_v8 = vpop.f32.mrf.mxu1 }
 0xb73   :  { %v1112_v16 = vadd.f32 %v1111_v8, %v1061_v15 }
 0xb74   :  { %v1610_v17 = vpop.f32.mrf.mxu1 }
 0xb75   :  { %v1118_v2 = vadd.f32 %v1112_v16, %v1881_v3 }
 0xb76   :  { %v1114_v19 = vpop.f32.mrf.mxu1 }
 0xb77   :  { %v1115_v20 = vadd.f32 %v1114_v19, %v1061_v15  ;;  %v1120_v21 = vsel %vm82_vm1, %v1118_v2, 0.0 }
 0xb78   :  { %1121 = vadd.xlane.f32.xlu1 %v1120_v21  ;;  %v1611_v23 = vpop.f32.mrf.mxu1 }
 0xb79   :  { %v1119_v27 = vadd.f32 %v1115_v20, %v1886_v4  ;;  %v1674_v4 = vld [vmem:[#allocation5] sm:$0xff]  }
 0xb7a   :  { %1615 = vmatpush3.bf16.msra.mxu0 %v1674_v4 }
 0xb7b   :  { %v1123_v22 = vsel %vm82_vm1, %v1119_v27, 0.0 }
 0xb7c   :  { %1124 = vadd.xlane.f32.xlu0 %v1123_v22 }
 0xc01   :  { %v1122_v24 = vpop.xlane.xlu1 %1121 }
 0xc02   :  { %v1127_v25 = vmul.f32 0.03125, %v1122_v24 }
 0xc04   :  { %v1129_v26 = vsub.f32 %v1118_v2, %v1127_v25 }
 0xc05   :  { %v1125_v28 = vpop.xlane.xlu0 %1124 }
 0xc06   :  { %v1128_v29 = vmul.f32 0.03125, %v1125_v28  ;;  %v1131_v14 = vmul.f32 %v1129_v26, %v1129_v26 }
 0xc08   :  { %v1130_v30 = vsub.f32 %v1119_v27, %v1128_v29  ;;  %v1133_v3 = vsel %vm82_vm1, %v1131_v14, 0.0 }
 0xc09   :  { %1134 = vadd.xlane.f32.xlu0 %v1133_v3 }
 0xc0a   :  { %v1132_v58 = vmul.f32 %v1130_v30, %v1130_v30 }
 0xc0c   :  { %v1136_v61 = vsel %vm82_vm1, %v1132_v58, 0.0 }
 0xc0d   :  { %1137 = vadd.xlane.f32.xlu1 %v1136_v61 }
 0xc92   :  { %v1135_v31 = vpop.xlane.xlu0 %1134 }
 0xc93   :  { %v1139_v32 = vmul.f32 0.03125, %v1135_v31 }
 0xc95   :  { %v1141_v33 = vadd.f32 1e-12, %v1139_v32 }
 0xc96   :  { %v1138_v34 = vpop.xlane.xlu1 %1137 }
 0xc97   :  { %1711 = vrsqrt.f32 %v1141_v33  ;;  %v1140_v35 = vmul.f32 0.03125, %v1138_v34 }
 0xc99   :  { %v1142_v36 = vadd.f32 1e-12, %v1140_v35 }
 0xc9b   :  { %1713 = vrsqrt.f32 %v1142_v36 }
 0xca4   :  { %v1712_v38 = vpop.eup %1711 }
 0xca5   :  { %v1145_v39 = vmul.f32 %v1712_v38, %v1129_v26 }
 0xca7   :  { %v1151_v43 = vmul.f32 %v1150_v18, %v1145_v39 }
 0xca8   :  { %v1714_v41 = vpop.eup %1713 }
 0xca9   :  { %v1146_v42 = vmul.f32 %v1714_v41, %v1130_v30  ;;  %v2085_v46 = vadd.f32 %v1156_v44, %v1151_v43 }
 0xcab   :  { %v1152_v45 = vmul.f32 %v1150_v18, %v1146_v42 }
 0xcad   :  { %v2087_v47 = vadd.f32 %v1156_v44, %v1152_v45 }
 0xcaf   :  { %v1159_v48 = vpack.c.bf16 %v2087_v47, %v2085_v46 }
 0xcb1   :  { %1617 = vmatmul.mubr.msk.bf16.vlgmr.msra.gmra.mxu0 %vm82_vm1, %v1159_v48 }
 0xd71   :  { %v1217_v55 = vpop.f32.mrf.mxu0 }
 0xd72   :  { %v1218_v56 = vadd.f32 %v1217_v55, %v1167_v54 }
 0xd73   :  { %v1618_v57 = vpop.f32.mrf.mxu0 }
 0xd74   :  { %v1226_v59 = vmul.f32 0.70710677, %v1218_v56  ;;  %v1224_v44 = vmul.f32 0.5, %v1218_v56 }
 0xd75   :  { %v1220_v60 = vpop.f32.mrf.mxu0 }
 0xd76   :  { %v1228_v63 = vand.u32 2147483647, %v1226_v59  ;;  %v1221_v1 = vadd.f32 %v1220_v60, %v1167_v54  ;;  %vm1268_vm6 = vcmp.lt.f32.partialorder %v1226_v59, 0.0 }
 0xd77   :  { %v1619_v5 = vpop.f32.mrf.mxu0 }
 0xd78   :  { %v1230_v6 = vmul.f32 0.3275911, %v1228_v63  ;;  %v1227_v10 = vmul.f32 0.70710677, %v1221_v1  ;;  %v1256_v15 = vsub.f32 0.0, %v1228_v63  ;;  %v1225_v45 = vmul.f32 0.5, %v1221_v1 }
 0xd7a   :  { %v1232_v0 = vadd.f32 1.0, %v1230_v6  ;;  %v1229_v11 = vand.u32 2147483647, %v1227_v10  ;;  %v1258_v8 = vmul.f32 %v1256_v15, %v1228_v63  ;;  %vm1269_vm7 = vcmp.lt.f32.partialorder %v1227_v10, 0.0 }
 0xd7c   :  { %1715 = vrcp.f32 %v1232_v0  ;;  %v1231_v12 = vmul.f32 0.3275911, %v1229_v11  ;;  %v1257_v16 = vsub.f32 0.0, %v1229_v11  ;;  %v1260_v19 = vmul.f32 1.442695, %v1258_v8 }
 0xd7e   :  { %v1233_v13 = vadd.f32 1.0, %v1231_v12  ;;  %v1259_v20 = vmul.f32 %v1257_v16, %v1229_v11 }
 0xd80   :  { %1717 = vrcp.f32 %v1233_v13  ;;  %v1262_v24 = vmul.f32 1.442695, %v1259_v20 }
 0xd81   :  { %1719 = vpow2.f32 %v1260_v19 }
 0xd82   :  { %1721 = vpow2.f32 %v1262_v24 }
 0xd89   :  { %v1716_v17 = vpop.eup %1715 }
 0xd8a   :  { %v1238_v2 = vmul.f32 1.0614054, %v1716_v17 }
 0xd8c   :  { %v1240_v21 = vadd.f32 -1.4531521, %v1238_v2 }
 0xd8d   :  { %v1718_v23 = vpop.eup %1717 }
 0xd8e   :  { %v1242_v27 = vmul.f32 %v1716_v17, %v1240_v21  ;;  %v1239_v22 = vmul.f32 1.0614054, %v1718_v23  ;;  %v1720_v32 = vpop.eup %1719 }
 0xd8f   :  { %v1722_v37 = vpop.eup %1721 }
 0xd90   :  { %v1244_v25 = vadd.f32 1.4214138, %v1242_v27  ;;  %v1241_v26 = vadd.f32 -1.4531521, %v1239_v22  ;;  %v1396_v27 = vsub.s32 7, %v1895_v7  ;;  %v1727_v22 = vld [vmem:[%s2134_s6] sm:$0xff] }
 0xd91   :  { %s1768_s6 = scalar_lea.vmem %s1410_s0, 256 }
 0xd92   :  { %v1246_v28 = vmul.f32 %v1716_v17, %v1244_v25  ;;  %v1243_v29 = vmul.f32 %v1718_v23, %v1241_v26  ;;  %p1769_p10 = scmp.ne.s32.totalorder %s1410_s0, %s1768_s6  ;;  %p1774_p12 = scmp.lt.s32.totalorder %s1768_s6, %s1768_s6 }
 0xd94   :  { %v1248_v14 = vadd.f32 -0.28449672, %v1246_v28  ;;  %v1245_v30 = vadd.f32 1.4214138, %v1243_v29  ;;  %v1397_v28 = vrot.slane %v1727_v22, %v1396_v27  ;;  %p1775_p13 = por %p1774_p12, %p1773_p11 }
 0xd96   :  { %v1250_v3 = vmul.f32 %v1716_v17, %v1248_v14  ;;  %v1247_v58 = vmul.f32 %v1718_v23, %v1245_v30  ;;  %p1776_p0 = pnand %p1775_p13, %p1769_p10 }
 0xd98   :  { %v1252_v61 = vadd.f32 0.2548296, %v1250_v3  ;;  %v1249_v62 = vadd.f32 -0.28449672, %v1247_v58 }
 0xd9a   :  { %v1254_v4 = vmul.f32 %v1716_v17, %v1252_v61  ;;  %v1251_v31 = vmul.f32 %v1718_v23, %v1249_v62 }
 0xd9c   :  { %v1264_v33 = vmul.f32 %v1720_v32, %v1254_v4  ;;  %v1253_v34 = vadd.f32 0.2548296, %v1251_v31 }
 0xd9e   :  { %v1266_v35 = vsub.f32 1.0, %v1264_v33  ;;  %v1255_v36 = vmul.f32 %v1718_v23, %v1253_v34  ;;  %v1390_v23 = vsub.s32 6, %v1895_v7 }
 0xda0   :  { %v1270_v38 = vsub.f32 0.0, %v1266_v35  ;;  %v1265_v39 = vmul.f32 %v1722_v37, %v1255_v36  ;;  %v1391_v24 = vrot.slane %v1727_v22, %v1390_v23 }
 0xda2   :  { %v1272_v18 = vsel %vm1268_vm6, %v1270_v38, %v1266_v35  ;;  %v1267_v40 = vsub.f32 1.0, %v1265_v39 }
 0xda3   :  { %v1274_v42 = vadd.f32 1.0, %v1272_v18 }
 0xda4   :  { %v1271_v41 = vsub.f32 0.0, %v1267_v40 }
 0xda5   :  { %v1276_v49 = vmul.f32 %v1274_v42, %v1224_v44 }
 0xda6   :  { %v1273_v43 = vsel %vm1269_vm7, %v1271_v41, %v1267_v40 }
 0xda7   :  { %v1275_v48 = vadd.f32 1.0, %v1273_v43 }
 0xda9   :  { %v1277_v50 = vmul.f32 %v1275_v48, %v1225_v45 }
 0xdab   :  { %v1278_v51 = vpack.c.bf16 %v1277_v50, %v1276_v49 }
 0xdad   :  { %1629 = vmatmul.mubr.msk.bf16.vlgmr.msra.gmra.mxu1 %vm1315_vm8, %v1278_v51 }
 0xe6d   :  { %v1353_v54 = vpop.f32.mrf.mxu1 }
 0xe6e   :  { %v1354_v55 = vadd.f32 %v1353_v54, %v1290_v53 }
 0xe6f   :  { %v1630_v57 = vpop.f32.mrf.mxu1 }
 0xe70   :  { %v1360_v59 = vadd.f32 %v1354_v55, %v2085_v46 }
 0xe71   :  { %v1356_v60 = vpop.f32.mrf.mxu1 }
 0xe72   :  { %v1357_v63 = vadd.f32 %v1356_v60, %v1290_v53  ;;  %v1362_v56 = vsel %vm82_vm1, %v1360_v59, 0.0 }
 0xe73   :  { %1363 = vadd.xlane.f32.xlu0 %v1362_v56  ;;  %v1631_v1 = vpop.f32.mrf.mxu1 }
 0xe74   :  { %v1361_v5 = vadd.f32 %v1357_v63, %v2087_v47 }
 0xe76   :  { %v1365_v6 = vsel %vm82_vm1, %v1361_v5, 0.0 }
 0xe77   :  { %1366 = vadd.xlane.f32.xlu1 %v1365_v6 }
 0xefc   :  { %v1364_v10 = vpop.xlane.xlu0 %1363 }
 0xefd   :  { %v1368_v0 = vmul.f32 0.03125, %v1364_v10 }
 0xeff   :  { %v1370_v11 = vsub.f32 %v1360_v59, %v1368_v0 }
 0xf00   :  { %v1367_v9 = vpop.xlane.xlu1 %1366 }
 0xf01   :  { %v1369_v12 = vmul.f32 0.03125, %v1367_v9  ;;  %v1372_v13 = vmul.f32 %v1370_v11, %v1370_v11 }
 0xf03   :  { %v1371_v15 = vsub.f32 %v1361_v5, %v1369_v12  ;;  %v1374_v46 = vsel %vm82_vm1, %v1372_v13, 0.0 }
 0xf04   :  { %1375 = vadd.xlane.f32.xlu0 %v1374_v46 }
 0xf05   :  { %v1373_v8 = vmul.f32 %v1371_v15, %v1371_v15 }
 0xf07   :  { %v1377_v16 = vsel %vm82_vm1, %v1373_v8, 0.0 }
 0xf08   :  { %1378 = vadd.xlane.f32.xlu1 %v1377_v16 }
 0xf8d   :  { %v1376_v17 = vpop.xlane.xlu0 %1375 }
 0xf8e   :  { %v1380_v2 = vmul.f32 0.03125, %v1376_v17 }
 0xf90   :  { %v1382_v47 = vadd.f32 1e-12, %v1380_v2 }
 0xf91   :  { %v1379_v19 = vpop.xlane.xlu1 %1378 }
 0xf92   :  { %1723 = vrsqrt.f32 %v1382_v47  ;;  %v1381_v20 = vmul.f32 0.03125, %v1379_v19 }
 0xf94   :  { %v1383_v21 = vadd.f32 1e-12, %v1381_v20 }
 0xf96   :  { %1725 = vrsqrt.f32 %v1383_v21 }
 0xf9f   :  { %v1724_v25 = vpop.eup %1723 }
 0xfa0   :  { %v1386_v26 = vmul.f32 %v1724_v25, %v1370_v11 }
 0xfa2   :  { %v1392_v29 = vmul.f32 %v1391_v24, %v1386_v26 }
 0xfa3   :  { %v1726_v14 = vpop.eup %1725 }
 0xfa4   :  { %v1387_v30 = vmul.f32 %v1726_v14, %v1371_v15  ;;  %v1398_v3 = vadd.f32 %v1397_v28, %v1392_v29 }
 0xfa6   :  { %v1393_v58 = vmul.f32 %v1391_v24, %v1387_v30  ;;  %v1400_v61 = vsel %vm82_vm1, %v1398_v3, 0.0 }
 0xfa7   :  { %1402 = vst [vmem:[#allocation7] sm:$0xff] %v1400_v61 }
 0xfa8   :  { %v1399_v62 = vadd.f32 %v1397_v28, %v1393_v58 }
 0xfaa   :  { %v1401_v7 = vsel %vm82_vm1, %v1399_v62, 0.0 }
 0xfab   :  { %1403 = vst [vmem:[#allocation7 + $0x8] sm:$0xff] %v1401_v7 }
 0xfac   :  { %1779 = shalt.err (!%p1776_p0)
}
 0xfad   :  { %s1815_s2 = smov 128  }
 0xfae   :  { %1415 = dma.vmem_to_hbm [thread:$0]  %s1410_s0, 256, %s2135_s7, [#allocation4], %s1815_s2, %s1815_s2, %s1812_s9  }
 0xfaf   :  { %1792 = dma.done.wait [#allocation4], 256  }
 0xfb0   :  { %1793 = vsyncadd [#allocation4], 4294967040 }
 0xfb1   :  { %1419 = vsyncpa [#allocation3], 1 }
 0xfb2   :  { %1420 = vsyncpa [#allocation6], 1 }
 0xfb3   :  { %1421 = vsyncpa [#allocation4], 1 }

</bundles_post_ra>
